<compile_context>
chip_gen: v5e
topology: v5e:2x2
jax: 0.10.0
libtpu: 0.0.40
codegen_flags: <defaults>
</compile_context>

<pallas_src>
import numpy as np

import jax
import jax.numpy as jnp
from jax import lax
from jax.experimental import pallas as pl
from jax.experimental.pallas import tpu as pltpu

BN_EPS = 1e-5

# Grid length (images are split into this many blocks).  Keep 1 on v5e/v6e
# (single TensorCore); TODO(synk): use 2 on v7x so both TCs get work.
NUM_IMAGE_BLOCKS = 1


def _double_conv_kernel(x_ref, mask_ref, w1_ref, b1_ref, w2_ref, b2_ref, o_ref):
    """Fused (conv3x3 -> BN -> ReLU) x 2 on a block of whole images.

    x_ref   : (M, W*Cin)          f32, rows = (image, row) flattened
    mask_ref: (2, M, 1)           f32, [0]=dy=-1 tap valid, [1]=dy=+1 tap valid
    w1_ref  : (3, W*Cin,  W*Cmid) bf16 banded weights, BN1 scale folded in
    b1_ref  : (1, W*Cmid)         f32  BN1 shift
    w2_ref  : (3, W*Cmid, W*Cout) bf16
    b2_ref  : (1, W*Cout)         f32
    o_ref   : (M, W*Cout)         f32, lane-dense output block
    """
    m_dn = mask_ref[0]                    # (M, 1) valid where row-in-image >= 1
    m_up = mask_ref[1]                    # (M, 1) valid where row-in-image <= H-2
    M = x_ref.shape[0]

    def stage(x_f32, w_ref, b_ref):
        # dy = -1 / +1 taps: shift the INPUT rows on the XLU and mask the
        # image-boundary rows -> the three MXU matmuls below are independent.
        x_dn = (pltpu.roll(x_f32, shift=1, axis=0) * m_dn).astype(jnp.bfloat16)
        x_md = x_f32.astype(jnp.bfloat16)
        x_up = (pltpu.roll(x_f32, shift=M - 1, axis=0) * m_up).astype(jnp.bfloat16)
        acc = jnp.dot(x_dn, w_ref[0], preferred_element_type=jnp.float32)
        acc = acc + jnp.dot(x_md, w_ref[1], preferred_element_type=jnp.float32)
        acc = acc + jnp.dot(x_up, w_ref[2], preferred_element_type=jnp.float32)
        # BN scale is folded into the weights; only shift + ReLU remain.
        return jnp.maximum(acc + b_ref[...], 0.0)

    y1 = stage(x_ref[...], w1_ref, b1_ref)      # intermediate never leaves VMEM
    y2 = stage(y1, w2_ref, b2_ref)
    o_ref[...] = y2.astype(o_ref.dtype)


def _toeplitz_conv_weights(w_hwio, W):
    """(3, 3, Cin, Cout) HWIO weights -> (3, W*Cin, W*Cout) banded matrices.

    out[dy, j_in*Cin+ci, j_out*Cout+co] = w[dy, j_in-j_out+1, ci, co]
    when |j_in - j_out| <= 1, else 0 (encodes the dx taps AND the zero 'same'
    padding along W).
    """
    kh, kw, cin, cout = w_hwio.shape
    sel = np.zeros((kw, W, W), np.float32)       # sel[dx, j_in, j_out]
    for dx in range(kw):
        for j_out in range(W):
            j_in = j_out + dx - 1
            if 0 <= j_in < W:
                sel[dx, j_in, j_out] = 1.0
    t = jnp.einsum("ydio,dab->yaibo", w_hwio.astype(jnp.float32), jnp.asarray(sel))
    return t.reshape(kh, W * cin, W * cout)


def prepare_double_conv(params, W, weight_dtype=jnp.bfloat16):
    """One-time preprocessing (hoisted out of the per-call hot path).

    Folds eval-mode BN scale into the conv weights, builds the banded
    (Toeplitz-in-W) matrices, casts them to bf16, and tiles the BN shift.
    """
    def fold(w_hwio, gamma, beta, mean, var):
        scale = gamma / jnp.sqrt(var + BN_EPS)           # per out-channel
        shift = beta - mean * scale
        w_eff = w_hwio.astype(jnp.float32) * scale       # scale folded into weights
        wt = _toeplitz_conv_weights(w_eff, W).astype(weight_dtype)
        c = shift.shape[0]
        b = jnp.tile(shift, W).reshape(1, W * c).astype(jnp.float32)
        return wt, b

    w1t, b1 = fold(params["w1"], params["bn1_gamma"], params["bn1_beta"],
                   params["bn1_mean"], params["bn1_var"])
    w2t, b2 = fold(params["w2"], params["bn2_gamma"], params["bn2_beta"],
                   params["bn2_mean"], params["bn2_var"])
    return {"w1t": w1t, "b1": b1, "w2t": w2t, "b2": b2}


def _double_conv_nhwc_impl(x_nhwc, prepared):
    N, H, W, Cin = x_nhwc.shape
    WCin = W * Cin
    WCmid = prepared["w1t"].shape[-1]
    WCout = prepared["w2t"].shape[-1]
    Cout = WCout // W
    NH = N * H
    G = NUM_IMAGE_BLOCKS
    assert NH % G == 0 and (NH // G) % H == 0, "blocks must hold whole images"
    Mb = NH // G

    # Flatten (W, C) into the lane axis; rows are (image, row).
    x2d = x_nhwc.reshape(NH, WCin).astype(jnp.float32)

    # Row-validity masks for the dy = -1 / +1 taps (they also kill cross-image
    # leakage of the in-kernel rolls).  numpy -> baked as an XLA constant.
    r = np.arange(NH) % H
    masks = jnp.asarray(
        np.stack([(r >= 1), (r <= H - 2)]).astype(np.float32)[:, :, None])  # (2, NH, 1)

    out2d = pl.pallas_call(
        _double_conv_kernel,
        out_shape=jax.ShapeDtypeStruct((NH, WCout), jnp.float32),
        grid_spec=pltpu.PrefetchScalarGridSpec(
            num_scalar_prefetch=0,
            grid=(G,),
            in_specs=[
                pl.BlockSpec((Mb, WCin), lambda g: (g, 0)),
                pl.BlockSpec((2, Mb, 1), lambda g: (0, g, 0)),
                pl.BlockSpec((3, WCin, WCmid), lambda g: (0, 0, 0)),
                pl.BlockSpec((1, WCmid), lambda g: (0, 0)),
                pl.BlockSpec((3, WCmid, WCout), lambda g: (0, 0, 0)),
                pl.BlockSpec((1, WCout), lambda g: (0, 0)),
            ],
            out_specs=pl.BlockSpec((Mb, WCout), lambda g: (g, 0)),
        ),
        compiler_params=pltpu.CompilerParams(
            dimension_semantics=("parallel",),
        ),
    )(x2d, masks, prepared["w1t"], prepared["b1"], prepared["w2t"], prepared["b2"])

    return out2d.reshape(N, H, W, Cout)


# NHWC entry point for callers that already run channels-last.
double_conv_forward_nhwc = jax.jit(_double_conv_nhwc_impl)


@jax.jit
def double_conv_forward(x_nchw, prepared):
    """DoubleConv forward: NCHW in, NCHW out (matches the PyTorch module).

    NOTE: the NCHW<->NHWC transposes below are real XLA copies (not free);
    prefer double_conv_forward_nhwc if the surrounding model is NHWC.
    """
    x_nhwc = jnp.transpose(x_nchw, (0, 2, 3, 1))
    y = _double_conv_nhwc_impl(x_nhwc, prepared)
    return jnp.transpose(y, (0, 3, 1, 2))


def init_double_conv_params(key, in_channels, out_channels, mid_channels=None):
    """Deterministic synthetic parameters matching nn.Conv2d/BatchNorm2d shapes."""
    if not mid_channels:
        mid_channels = out_channels
    keys = jax.random.split(key, 6)
    # Conv weights, PyTorch shape (Cout, Cin, 3, 3) -> stored HWIO.
    w1_oihw = jax.random.normal(keys[0], (mid_channels, in_channels, 3, 3),
                                jnp.float32) * 0.1
    w2_oihw = jax.random.normal(keys[1], (out_channels, mid_channels, 3, 3),
                                jnp.float32) * 0.1
    params = {
        "w1": jnp.transpose(w1_oihw, (2, 3, 1, 0)),
        "bn1_gamma": 1.0 + 0.1 * jax.random.normal(keys[2], (mid_channels,), jnp.float32),
        "bn1_beta": 0.1 * jax.random.normal(keys[3], (mid_channels,), jnp.float32),
        "bn1_mean": jnp.zeros((mid_channels,), jnp.float32),
        "bn1_var": jnp.ones((mid_channels,), jnp.float32),
        "w2": jnp.transpose(w2_oihw, (2, 3, 1, 0)),
        "bn2_gamma": 1.0 + 0.1 * jax.random.normal(keys[4], (out_channels,), jnp.float32),
        "bn2_beta": 0.1 * jax.random.normal(keys[5], (out_channels,), jnp.float32),
        "bn2_mean": jnp.zeros((out_channels,), jnp.float32),
        "bn2_var": jnp.ones((out_channels,), jnp.float32),
    }
    return params


def _reference_double_conv(x_nchw, params):
    """Pure-JAX f32 reference (lax.conv) for correctness check."""
    def conv_bn_relu_ref(x, w_hwio, gamma, beta, mean, var):
        y = lax.conv_general_dilated(
            x, w_hwio, window_strides=(1, 1), padding="SAME",
            dimension_numbers=("NHWC", "HWIO", "NHWC"))
        scale = gamma / jnp.sqrt(var + BN_EPS)
        shift = beta - mean * scale
        return jnp.maximum(y * scale + shift, 0.0)

    x = jnp.transpose(x_nchw, (0, 2, 3, 1))
    x = conv_bn_relu_ref(x, params["w1"], params["bn1_gamma"], params["bn1_beta"],
                         params["bn1_mean"], params["bn1_var"])
    x = conv_bn_relu_ref(x, params["w2"], params["bn2_gamma"], params["bn2_beta"],
                         params["bn2_mean"], params["bn2_var"])
    return jnp.transpose(x, (0, 3, 1, 2))


if __name__ == "__main__":
    key = jax.random.PRNGKey(0)
    k_x, k_p = jax.random.split(key)

    N, C_in, H, W = 2, 4, 16, 16
    C_out = 8

    x = jax.random.normal(k_x, (N, C_in, H, W), jnp.float32)
    params = init_double_conv_params(k_p, C_in, C_out)

    # One-time preprocessing (Toeplitz banding, BN fold, bf16 cast).
    prepared = jax.tree_util.tree_map(jax.block_until_ready,
                                      prepare_double_conv(params, W))

    out = jax.block_until_ready(double_conv_forward(x, prepared))

    ref = _reference_double_conv(x, params)
    assert out.shape == (N, C_out, H, W), out.shape
    max_err = float(jnp.max(jnp.abs(out - ref)))
    # bf16 matmul operands -> loosened tolerance vs the f32 reference.
    assert jnp.allclose(out, ref, atol=5e-2, rtol=5e-2), max_err

    print("KERNEL_OK")
</pallas_src>

<mosaic_0001>
module attributes {stable_mosaic.version = 11 : i64} {
  func.func @_double_conv_kernel(%arg0: i32, %arg1: memref<32x64xf32, #tpu.memory_space<vmem>>, %arg2: memref<2x32x1xf32, #tpu.memory_space<vmem>>, %arg3: memref<3x64x128xbf16, #tpu.memory_space<vmem>>, %arg4: memref<1x128xf32, #tpu.memory_space<vmem>>, %arg5: memref<3x128x128xbf16, #tpu.memory_space<vmem>>, %arg6: memref<1x128xf32, #tpu.memory_space<vmem>>, %arg7: memref<32x128xf32, #tpu.memory_space<vmem>>) attributes {dimension_semantics = [#tpu.dimension_semantics<parallel>], iteration_bounds = array<i64: 1>, scalar_prefetch = 0 : i64, scratch_operands = 0 : i64, tpu.core_type = #tpu.core_type<tc>, window_params = [{transform_indices = @transform_0, window_bounds = array<i64: 32, 64>}, {transform_indices = @transform_1, window_bounds = array<i64: 2, 32, 1>}, {pipeline_mode = #tpu.pipeline_mode<synchronous>, transform_indices = @transform_2, window_bounds = array<i64: 3, 64, 128>}, {pipeline_mode = #tpu.pipeline_mode<synchronous>, transform_indices = @transform_3, window_bounds = array<i64: 1, 128>}, {pipeline_mode = #tpu.pipeline_mode<synchronous>, transform_indices = @transform_4, window_bounds = array<i64: 3, 128, 128>}, {pipeline_mode = #tpu.pipeline_mode<synchronous>, transform_indices = @transform_5, window_bounds = array<i64: 1, 128>}, {transform_indices = @transform_6, window_bounds = array<i64: 32, 128>}]} {
    %c0 = arith.constant 0 : index
    %c0_0 = arith.constant 0 : index
    %c0_1 = arith.constant 0 : index
    %0 = vector.load %arg2[%c0, %c0_0, %c0_1] : memref<2x32x1xf32, #tpu.memory_space<vmem>>, vector<1x32x1xf32>
    %1 = vector.shape_cast %0 : vector<1x32x1xf32> to vector<32x1xf32>
    %c1 = arith.constant 1 : index
    %c0_2 = arith.constant 0 : index
    %c0_3 = arith.constant 0 : index
    %2 = vector.load %arg2[%c1, %c0_2, %c0_3] : memref<2x32x1xf32, #tpu.memory_space<vmem>>, vector<1x32x1xf32>
    %3 = vector.shape_cast %2 : vector<1x32x1xf32> to vector<32x1xf32>
    %c0_4 = arith.constant 0 : index
    %c0_5 = arith.constant 0 : index
    %4 = vector.load %arg1[%c0_4, %c0_5] : memref<32x64xf32, #tpu.memory_space<vmem>>, vector<32x64xf32>
    %c1_i32 = arith.constant 1 : i32
    %5 = tpu.dynamic_rotate %4 by %c1_i32 dim 0 : vector<32x64xf32>, i32 -> vector<32x64xf32>
    %6 = vector.broadcast %1 : vector<32x1xf32> to vector<32x64xf32>
    %7 = arith.mulf %5, %6 : vector<32x64xf32>
    %8 = arith.truncf %7 : vector<32x64xf32> to vector<32x64xbf16>
    %9 = arith.truncf %4 : vector<32x64xf32> to vector<32x64xbf16>
    %c31_i32 = arith.constant 31 : i32
    %10 = tpu.dynamic_rotate %4 by %c31_i32 dim 0 : vector<32x64xf32>, i32 -> vector<32x64xf32>
    %11 = vector.broadcast %3 : vector<32x1xf32> to vector<32x64xf32>
    %12 = arith.mulf %10, %11 : vector<32x64xf32>
    %13 = arith.truncf %12 : vector<32x64xf32> to vector<32x64xbf16>
    %c0_6 = arith.constant 0 : index
    %c0_7 = arith.constant 0 : index
    %c0_8 = arith.constant 0 : index
    %14 = vector.load %arg3[%c0_6, %c0_7, %c0_8] : memref<3x64x128xbf16, #tpu.memory_space<vmem>>, vector<1x64x128xbf16>
    %15 = vector.shape_cast %14 : vector<1x64x128xbf16> to vector<64x128xbf16>
    %cst = arith.constant dense<0.000000e+00> : vector<32x128xf32>
    %16 = tpu.matmul %8, %15, %cst {dimension_numbers = #tpu.dot_dimension_numbers<[1], [0], [0], [1], [0, 0, 1, 1], [], []>} : vector<32x64xbf16>, vector<64x128xbf16>, vector<32x128xf32> -> vector<32x128xf32>
    %c1_9 = arith.constant 1 : index
    %c0_10 = arith.constant 0 : index
    %c0_11 = arith.constant 0 : index
    %17 = vector.load %arg3[%c1_9, %c0_10, %c0_11] : memref<3x64x128xbf16, #tpu.memory_space<vmem>>, vector<1x64x128xbf16>
    %18 = vector.shape_cast %17 : vector<1x64x128xbf16> to vector<64x128xbf16>
    %cst_12 = arith.constant dense<0.000000e+00> : vector<32x128xf32>
    %19 = tpu.matmul %9, %18, %cst_12 {dimension_numbers = #tpu.dot_dimension_numbers<[1], [0], [0], [1], [0, 0, 1, 1], [], []>} : vector<32x64xbf16>, vector<64x128xbf16>, vector<32x128xf32> -> vector<32x128xf32>
    %20 = arith.addf %16, %19 : vector<32x128xf32>
    %c2 = arith.constant 2 : index
    %c0_13 = arith.constant 0 : index
    %c0_14 = arith.constant 0 : index
    %21 = vector.load %arg3[%c2, %c0_13, %c0_14] : memref<3x64x128xbf16, #tpu.memory_space<vmem>>, vector<1x64x128xbf16>
    %22 = vector.shape_cast %21 : vector<1x64x128xbf16> to vector<64x128xbf16>
    %cst_15 = arith.constant dense<0.000000e+00> : vector<32x128xf32>
    %23 = tpu.matmul %13, %22, %cst_15 {dimension_numbers = #tpu.dot_dimension_numbers<[1], [0], [0], [1], [0, 0, 1, 1], [], []>} : vector<32x64xbf16>, vector<64x128xbf16>, vector<32x128xf32> -> vector<32x128xf32>
    %24 = arith.addf %20, %23 : vector<32x128xf32>
    %c0_16 = arith.constant 0 : index
    %c0_17 = arith.constant 0 : index
    %25 = vector.load %arg4[%c0_16, %c0_17] : memref<1x128xf32, #tpu.memory_space<vmem>>, vector<1x128xf32>
    %26 = vector.broadcast %25 : vector<1x128xf32> to vector<32x128xf32>
    %27 = arith.addf %24, %26 : vector<32x128xf32>
    %cst_18 = arith.constant 0.000000e+00 : f32
    %28 = vector.broadcast %cst_18 : f32 to vector<32x128xf32>
    %29 = arith.maximumf %27, %28 : vector<32x128xf32>
    %c1_i32_19 = arith.constant 1 : i32
    %30 = tpu.dynamic_rotate %29 by %c1_i32_19 dim 0 : vector<32x128xf32>, i32 -> vector<32x128xf32>
    %31 = vector.broadcast %1 : vector<32x1xf32> to vector<32x128xf32>
    %32 = arith.mulf %30, %31 : vector<32x128xf32>
    %33 = arith.truncf %32 : vector<32x128xf32> to vector<32x128xbf16>
    %34 = arith.truncf %29 : vector<32x128xf32> to vector<32x128xbf16>
    %c31_i32_20 = arith.constant 31 : i32
    %35 = tpu.dynamic_rotate %29 by %c31_i32_20 dim 0 : vector<32x128xf32>, i32 -> vector<32x128xf32>
    %36 = vector.broadcast %3 : vector<32x1xf32> to vector<32x128xf32>
    %37 = arith.mulf %35, %36 : vector<32x128xf32>
    %38 = arith.truncf %37 : vector<32x128xf32> to vector<32x128xbf16>
    %c0_21 = arith.constant 0 : index
    %c0_22 = arith.constant 0 : index
    %c0_23 = arith.constant 0 : index
    %39 = vector.load %arg5[%c0_21, %c0_22, %c0_23] : memref<3x128x128xbf16, #tpu.memory_space<vmem>>, vector<1x128x128xbf16>
    %40 = vector.shape_cast %39 : vector<1x128x128xbf16> to vector<128x128xbf16>
    %cst_24 = arith.constant dense<0.000000e+00> : vector<32x128xf32>
    %41 = tpu.matmul %33, %40, %cst_24 {dimension_numbers = #tpu.dot_dimension_numbers<[1], [0], [0], [1], [0, 0, 1, 1], [], []>} : vector<32x128xbf16>, vector<128x128xbf16>, vector<32x128xf32> -> vector<32x128xf32>
    %c1_25 = arith.constant 1 : index
    %c0_26 = arith.constant 0 : index
    %c0_27 = arith.constant 0 : index
    %42 = vector.load %arg5[%c1_25, %c0_26, %c0_27] : memref<3x128x128xbf16, #tpu.memory_space<vmem>>, vector<1x128x128xbf16>
    %43 = vector.shape_cast %42 : vector<1x128x128xbf16> to vector<128x128xbf16>
    %cst_28 = arith.constant dense<0.000000e+00> : vector<32x128xf32>
    %44 = tpu.matmul %34, %43, %cst_28 {dimension_numbers = #tpu.dot_dimension_numbers<[1], [0], [0], [1], [0, 0, 1, 1], [], []>} : vector<32x128xbf16>, vector<128x128xbf16>, vector<32x128xf32> -> vector<32x128xf32>
    %45 = arith.addf %41, %44 : vector<32x128xf32>
    %c2_29 = arith.constant 2 : index
    %c0_30 = arith.constant 0 : index
    %c0_31 = arith.constant 0 : index
    %46 = vector.load %arg5[%c2_29, %c0_30, %c0_31] : memref<3x128x128xbf16, #tpu.memory_space<vmem>>, vector<1x128x128xbf16>
    %47 = vector.shape_cast %46 : vector<1x128x128xbf16> to vector<128x128xbf16>
    %cst_32 = arith.constant dense<0.000000e+00> : vector<32x128xf32>
    %48 = tpu.matmul %38, %47, %cst_32 {dimension_numbers = #tpu.dot_dimension_numbers<[1], [0], [0], [1], [0, 0, 1, 1], [], []>} : vector<32x128xbf16>, vector<128x128xbf16>, vector<32x128xf32> -> vector<32x128xf32>
    %49 = arith.addf %45, %48 : vector<32x128xf32>
    %c0_33 = arith.constant 0 : index
    %c0_34 = arith.constant 0 : index
    %50 = vector.load %arg6[%c0_33, %c0_34] : memref<1x128xf32, #tpu.memory_space<vmem>>, vector<1x128xf32>
    %51 = vector.broadcast %50 : vector<1x128xf32> to vector<32x128xf32>
    %52 = arith.addf %49, %51 : vector<32x128xf32>
    %cst_35 = arith.constant 0.000000e+00 : f32
    %53 = vector.broadcast %cst_35 : f32 to vector<32x128xf32>
    %54 = arith.maximumf %52, %53 : vector<32x128xf32>
    %c0_36 = arith.constant 0 : index
    %c0_37 = arith.constant 0 : index
    %55 = vector.load %arg7[%c0_36, %c0_37] : memref<32x128xf32, #tpu.memory_space<vmem>>, vector<32x128xf32>
    tpu.vector_store %arg7[%c0_36, %c0_37], %54 {strides = array<i32>} : memref<32x128xf32, #tpu.memory_space<vmem>>, vector<32x128xf32>,
    return
  }
  func.func @transform_0(%arg0: i32) -> (i32, i32) {
    %c0_i32 = arith.constant 0 : i32
    %c0_i32_0 = arith.constant 0 : i32
    return %arg0, %c0_i32 : i32, i32
  }
  func.func @transform_1(%arg0: i32) -> (i32, i32, i32) {
    %c0_i32 = arith.constant 0 : i32
    %c0_i32_0 = arith.constant 0 : i32
    %c0_i32_1 = arith.constant 0 : i32
    return %c0_i32, %arg0, %c0_i32_0 : i32, i32, i32
  }
  func.func @transform_2(%arg0: i32) -> (i32, i32, i32) {
    %c0_i32 = arith.constant 0 : i32
    %c0_i32_0 = arith.constant 0 : i32
    %c0_i32_1 = arith.constant 0 : i32
    %c0_i32_2 = arith.constant 0 : i32
    return %c0_i32, %c0_i32_0, %c0_i32_1 : i32, i32, i32
  }
  func.func @transform_3(%arg0: i32) -> (i32, i32) {
    %c0_i32 = arith.constant 0 : i32
    %c0_i32_0 = arith.constant 0 : i32
    %c0_i32_1 = arith.constant 0 : i32
    return %c0_i32, %c0_i32_0 : i32, i32
  }
  func.func @transform_4(%arg0: i32) -> (i32, i32, i32) {
    %c0_i32 = arith.constant 0 : i32
    %c0_i32_0 = arith.constant 0 : i32
    %c0_i32_1 = arith.constant 0 : i32
    %c0_i32_2 = arith.constant 0 : i32
    return %c0_i32, %c0_i32_0, %c0_i32_1 : i32, i32, i32
  }
  func.func @transform_5(%arg0: i32) -> (i32, i32) {
    %c0_i32 = arith.constant 0 : i32
    %c0_i32_0 = arith.constant 0 : i32
    %c0_i32_1 = arith.constant 0 : i32
    return %c0_i32, %c0_i32_0 : i32, i32
  }
  func.func @transform_6(%arg0: i32) -> (i32, i32) {
    %c0_i32 = arith.constant 0 : i32
    %c0_i32_0 = arith.constant 0 : i32
    return %arg0, %c0_i32 : i32, i32
  }
}

</mosaic_0001>

<bundles_post_ra>
// kernel: double_conv_forward.1
= control target key start
LH: loop header
LB: loop body
LE: loop exit
PB: predicated region body
PF: predicated region fallthrough
CT: control target
= control target key end

     0   :  { %v858_v0 = vmov 0   ;;  %vm152_vm0 = vcmask 523264   ;;  %v41_v27 = vlaneseq  ;;  %s1130_s1 = inlined_call_operand.vmem [shape: f32[2,32,1], index: 1, kind: input, shape index: {}]   ;;  %s1131_s2 = inlined_call_operand.vmem [shape: bf16[3,64,128], index: 2, kind: input, shape index: {}]   ;;  %s1132_s0 = inlined_call_operand.vmem [shape: f32[32,64], index: 0, kind: input, shape index: {}]   ;;  %s1133_s4 = inlined_call_operand.vmem [shape: bf16[3,128,128], index: 4, kind: input, shape index: {}]   ;;  %s1134_s3 = inlined_call_operand.vmem [shape: f32[1,128], index: 3, kind: input, shape index: {}]   ;;  %s1135_s5 = inlined_call_operand.vmem [shape: f32[1,128], index: 5, kind: input, shape index: {}]   ;;  %s1136_s6 = inlined_call_operand.vmem [shape: f32[32,128], index: 6, kind: output, shape index: {}]  }
   0x1   :  { %854 = vset.pattern.permute.xlu1 %v858_v0  ;;  %853 = vset.pattern.permute.xlu0 %v858_v0  ;;  %v606_v1 = vld [vmem:[%s1130_s1 + $0x20] sm:$0xff]  ;;  %v608_v3 = vld [vmem:[%s1130_s1 + $0x30] sm:$0xff]  ;;  %v815_v4 = vld [vmem:[%s1131_s2 + $0x38] sm:$0xff] }
   0x2   :  { %v24_v2 = vld [vmem:[%s1130_s1] sm:$0xff]  ;;  %87 = vperm.xlu0 %853, %v606_v1   ;;  %855 = vset.pattern.permute.xlu2 %v858_v0  ;;  %v811_v5 = vld [vmem:[%s1131_s2 + $0x18] sm:$0xff]  ;;  %v814_v7 = vld [vmem:[%s1131_s2 + $0x30] sm:$0xff]  ;;  %v971_v29 = vshrl.u32 %v41_v27, 7 }
   0x3   :  { %50 = vperm.xlu1 %854, %v24_v2   ;;  %97 = vperm.xlu2 %855, %v608_v3   ;;  %v819_v6 = vld [vmem:[%s1131_s2 + $0x58] sm:$0xff]  ;;  %v607_v8 = vld [vmem:[%s1130_s1 + $0x28] sm:$0xff]  ;;  %v26_v11 = vld [vmem:[%s1130_s1 + $0x10] sm:$0xff] }
   0x4   :  { %163 = vmatpush.bf16.msra.mxu0 %v815_v4  ;;  %212 = vmatpush.bf16.msra.mxu1 %v811_v5  ;;  %v25_v9 = vld [vmem:[%s1130_s1 + $0x8] sm:$0xff]  ;;  %v609_v10 = vld [vmem:[%s1130_s1 + $0x38] sm:$0xff]  ;;  %v810_v14 = vld [vmem:[%s1131_s2 + $0x10] sm:$0xff]  ;;  %vm80_vm1 = vcmp.lt.s32.totalorder %v971_v29, 7  ;;  %vm43_vm2 = vcmp.lt.s32.totalorder %v971_v29, 1 }
   0x5   :  { %270 = vmatpush.bf16.msra.mxu2 %v819_v6  ;;  %v27_v12 = vld [vmem:[%s1130_s1 + $0x18] sm:$0xff]  ;;  %v813_v13 = vld [vmem:[%s1131_s2 + $0x28] sm:$0xff]  ;;  %v818_v15 = vld [vmem:[%s1131_s2 + $0x50] sm:$0xff] }
   0x6   :  { %v812_v16 = vld [vmem:[%s1131_s2 + $0x20] sm:$0xff]  ;;  %v809_v17 = vld [vmem:[%s1131_s2 + $0x8] sm:$0xff]  ;;  %v36_v24 = vld [vmem:[%s1132_s0 + $0x18] sm:$0xff] }
   0x7   :  { %v817_v18 = vld [vmem:[%s1131_s2 + $0x48] sm:$0xff]  ;;  %v33_v19 = vld [vmem:[%s1132_s0] sm:$0xff]  ;;  %v35_v25 = vld [vmem:[%s1132_s0 + $0x10] sm:$0xff]  ;;  %v40_v35 = vrot.slane %v36_v24, 7  ;;  %v79_v51 = vrot.slane %v36_v24, 1 }
   0x8   :  { %164 = vmatpush.bf16.msra.mxu0 %v814_v7  ;;  %213 = vmatpush.bf16.msra.mxu1 %v810_v14  ;;  %v34_v20 = vld [vmem:[%s1132_s0 + $0x8] sm:$0xff]  ;;  %v808_v22 = vld [vmem:[%s1131_s2] sm:$0xff]  ;;  %v75_v26 = vpack.c.bf16 %v36_v24, %v35_v25  ;;  %v835_v28 = vld [vmem:[%s1133_s4 + $0x78] sm:$0xff]  ;;  %v76_v32 = vrot.slane %v33_v19, 1  ;;  %v37_v34 = vrot.slane %v33_v19, 7  ;;  %v78_v36 = vrot.slane %v35_v25, 1 }
   0x9   :  { %271 = vmatpush.bf16.msra.mxu2 %v818_v15  ;;  %v74_v21 = vpack.c.bf16 %v34_v20, %v33_v19  ;;  %v816_v23 = vld [vmem:[%s1131_s2 + $0x40] sm:$0xff]  ;;  %412 = vmatpush.bf16.msra.mxu3 %v835_v28  ;;  %v77_v33 = vrot.slane %v34_v20, 1  ;;  %v38_v37 = vrot.slane %v34_v20, 7  ;;  %v39_v52 = vrot.slane %v35_v25, 7  ;;  %v834_v2 = vld [vmem:[%s1133_s4 + $0x70] sm:$0xff]  ;;  %v833_v3 = vld [vmem:[%s1133_s4 + $0x68] sm:$0xff] }
   0xa   :  { %92 = vperm.xlu0 %853, %v607_v8   ;;  %v47_v39 = vsel %vm43_vm2, %v40_v35, %v37_v34  ;;  %v81_v54 = vsel %vm80_vm1, %v78_v36, %v79_v51  ;;  %v84_v55 = vsel %vm80_vm1, %v79_v51, %v76_v32  ;;  %v832_v4 = vld [vmem:[%s1133_s4 + $0x60] sm:$0xff]  ;;  %v843_v5 = vld [vmem:[%s1133_s4 + $0xb8] sm:$0xff]  ;;  %v842_v7 = vld [vmem:[%s1133_s4 + $0xb0] sm:$0xff] }
   0xb   :  { %55 = vperm.xlu1 %854, %v25_v9   ;;  %102 = vperm.xlu2 %855, %v609_v10   ;;  %v83_v38 = vsel %vm80_vm1, %v76_v32, %v77_v33  ;;  %v82_v40 = vsel %vm80_vm1, %v77_v33, %v78_v36  ;;  %v46_v41 = vsel %vm43_vm2, %v37_v34, %v38_v37  ;;  %v831_v6 = vld [vmem:[%s1133_s4 + $0x58] sm:$0xff]  ;;  %v830_v8 = vld [vmem:[%s1133_s4 + $0x50] sm:$0xff]  ;;  %v841_v10 = vld [vmem:[%s1133_s4 + $0xa8] sm:$0xff] }
   0xc   :  { %165 = vmatpush.bf16.msra.mxu0 %v813_v13  ;;  %214 = vmatpush.bf16.msra.mxu1 %v809_v17  ;;  %v45_v57 = vsel %vm43_vm2, %v38_v37, %v39_v52  ;;  %v44_v59 = vsel %vm43_vm2, %v39_v52, %v40_v35  ;;  %v827_v9 = vld [vmem:[%s1133_s4 + $0x38] sm:$0xff]  ;;  %v840_v13 = vld [vmem:[%s1133_s4 + $0xa0] sm:$0xff]  ;;  %v825_v15 = vld [vmem:[%s1133_s4 + $0x28] sm:$0xff] }
   0xd   :  { %272 = vmatpush.bf16.msra.mxu2 %v817_v18  ;;  %413 = vmatpush.bf16.msra.mxu3 %v834_v2  ;;  %v828_v14 = vld [vmem:[%s1133_s4 + $0x40] sm:$0xff]  ;;  %v838_v18 = vld [vmem:[%s1133_s4 + $0x90] sm:$0xff]  ;;  %v823_v19 = vld [vmem:[%s1133_s4 + $0x18] sm:$0xff] }
   0xe   :  { %v824_v17 = vld [vmem:[%s1133_s4 + $0x20] sm:$0xff]  ;;  %v837_v20 = vld [vmem:[%s1133_s4 + $0x88] sm:$0xff] }
   0xf   :  { %v821_v25 = vld [vmem:[%s1133_s4 + $0x8] sm:$0xff]  ;;  %v820_v27 = vld [vmem:[%s1133_s4] sm:$0xff] }
  0x10   :  { %166 = vmatpush.bf16.msra.mxu0 %v812_v16  ;;  %215 = vmatpush.bf16.msra.mxu1 %v808_v22  ;;  %v839_v16 = vld [vmem:[%s1133_s4 + $0x98] sm:$0xff]  ;;  %v822_v22 = vld [vmem:[%s1133_s4 + $0x10] sm:$0xff]  ;;  %v856_v35 = vld [vmem:[%s1134_s3] ss:$0 sm:$0xff] }
  0x11   :  { %273 = vmatpush.bf16.msra.mxu2 %v816_v23  ;;  %414 = vmatpush.bf16.msra.mxu3 %v833_v3  ;;  %v836_v23 = vld [vmem:[%s1133_s4 + $0x80] sm:$0xff] }
  0x12   :  { %60 = vperm.xlu0 %853, %v26_v11   ;;  %v829_v11 = vld [vmem:[%s1133_s4 + $0x48] sm:$0xff] }
  0x13   :  { %65 = vperm.xlu1 %854, %v27_v12   ;;  %634 = vmatmul.msk.bf16.vlgmr.msra.gmra.mxu0 %vm152_vm0, %v74_v21  ;;  %v826_v12 = vld [vmem:[%s1133_s4 + $0x30] sm:$0xff] }
  0x14   :  { %563 = vmatpush.bf16.msrb.mxu1 %v843_v5  ;;  %479 = vmatpush.bf16.msrb.mxu0 %v827_v9 }
  0x15   :  { %415 = vmatpush.bf16.msra.mxu3 %v832_v4  ;;  %844 = vmatpush.bf16.msrb.mxu2 %v827_v9 }
  0x18   :  { %564 = vmatpush.bf16.msrb.mxu1 %v842_v7  ;;  %480 = vmatpush.bf16.msrb.mxu0 %v826_v12 }
  0x19   :  { %416 = vmatpush.bf16.msra.mxu3 %v831_v6  ;;  %845 = vmatpush.bf16.msrb.mxu2 %v826_v12 }
  0x1c   :  { %565 = vmatpush.bf16.msrb.mxu1 %v841_v10  ;;  %481 = vmatpush.bf16.msrb.mxu0 %v825_v15 }
  0x1d   :  { %417 = vmatpush.bf16.msra.mxu3 %v830_v8  ;;  %846 = vmatpush.bf16.msrb.mxu2 %v825_v15 }
  0x20   :  { %566 = vmatpush.bf16.msrb.mxu1 %v840_v13  ;;  %482 = vmatpush.bf16.msrb.mxu0 %v824_v17 }
  0x21   :  { %418 = vmatpush.bf16.msra.mxu3 %v829_v11  ;;  %847 = vmatpush.bf16.msrb.mxu2 %v824_v17 }
  0x23   :  { %635 = vmatmul.msk.bf16.gmra.mxu0 %vm152_vm0, %v75_v26 }
  0x24   :  { %567 = vmatpush.bf16.msrb.mxu1 %v839_v16  ;;  %483 = vmatpush.bf16.msrb.mxu0 %v823_v19 }
  0x25   :  { %419 = vmatpush.bf16.msra.mxu3 %v828_v14  ;;  %848 = vmatpush.bf16.msrb.mxu2 %v823_v19 }
  0x28   :  { %568 = vmatpush.bf16.msrb.mxu1 %v838_v18  ;;  %484 = vmatpush.bf16.msrb.mxu0 %v822_v22 }
  0x29   :  { %849 = vmatpush.bf16.msrb.mxu2 %v822_v22 }
  0x2c   :  { %569 = vmatpush.bf16.msrb.mxu1 %v837_v20  ;;  %485 = vmatpush.bf16.msrb.mxu0 %v821_v25 }
  0x2d   :  { %850 = vmatpush.bf16.msrb.mxu2 %v821_v25 }
  0x30   :  { %570 = vmatpush.bf16.msrb.mxu1 %v836_v23  ;;  %486 = vmatpush.bf16.msrb.mxu0 %v820_v27 }
  0x31   :  { %851 = vmatpush.bf16.msrb.mxu2 %v820_v27 }
  0x5d   :  { %v993_v46 = vpop.permute.xlu2 %97 }
  0x5e   :  { %v107_v60 = vmul.f32 %v993_v46, %v81_v54 }
  0x65   :  { %v999_v53 = vpop.permute.xlu2 %102 }
  0x66   :  { %v108_v61 = vmul.f32 %v999_v53, %v84_v55 }
  0x68   :  { %v110_v0 = vpack.c.bf16 %v108_v61, %v107_v60 }
  0x74   :  { %v973_v30 = vpop.permute.xlu0 %87 }
  0x75   :  { %v975_v31 = vpop.permute.xlu1 %50  ;;  %v105_v44 = vmul.f32 %v973_v30, %v83_v38 }
  0x76   :  { %v68_v45 = vmul.f32 %v975_v31, %v47_v39 }
  0x7c   :  { %v987_v42 = vpop.permute.xlu0 %92 }
  0x7d   :  { %v989_v43 = vpop.permute.xlu1 %55  ;;  %v106_v47 = vmul.f32 %v987_v42, %v82_v40 }
  0x7e   :  { %v69_v48 = vmul.f32 %v989_v43, %v46_v41 }
  0x7f   :  { %v109_v49 = vpack.c.bf16 %v106_v47, %v105_v44 }
  0x80   :  { %v72_v50 = vpack.c.bf16 %v69_v48, %v68_v45 }
  0x81   :  { %678 = vmatmul.msk.bf16.vlgmr.msra.gmra.mxu2 %vm152_vm0, %v109_v49 }
  0x82   :  { %652 = vmatmul.msk.bf16.vlgmr.msra.gmra.mxu1 %vm152_vm0, %v72_v50 }
  0x84   :  { %v1005_v56 = vpop.permute.xlu0 %60 }
  0x85   :  { %v1009_v58 = vpop.permute.xlu1 %65  ;;  %v70_v62 = vmul.f32 %v1005_v56, %v45_v57 }
  0x86   :  { %v71_v63 = vmul.f32 %v1009_v58, %v44_v59 }
  0x88   :  { %v73_v1 = vpack.c.bf16 %v71_v63, %v70_v62 }
  0x90   :  { %v168_v21 = vpop.f32.mrf.mxu0 }
  0x91   :  { %679 = vmatmul.msk.bf16.gmra.mxu2 %vm152_vm0, %v110_v0 }
  0x92   :  { %653 = vmatmul.msk.bf16.gmra.mxu1 %vm152_vm0, %v73_v1 }
  0x98   :  { %v170_v28 = vpop.f32.mrf.mxu0 }
  0xa0   :  { %v173_v44 = vpop.f32.mrf.mxu0 }
  0xa8   :  { %v175_v60 = vpop.f32.mrf.mxu0 }
  0xff   :  { %v217_v24 = vpop.f32.mrf.mxu1 }
 0x100   :  { %v218_v33 = vadd.f32 %v217_v24, %v168_v21 }
 0x104   :  { %v275_v26 = vpop.f32.mrf.mxu2 }
 0x105   :  { %v285_v34 = vadd.f32 %v275_v26, %v218_v33 }
 0x107   :  { %v219_v32 = vpop.f32.mrf.mxu1  ;;  %v293_v38 = vadd.f32 %v856_v35, %v285_v34 }
 0x108   :  { %v220_v36 = vadd.f32 %v219_v32, %v170_v28  ;;  %v857_v32 = vld [vmem:[%s1135_s5] ss:$0 sm:$0xff] }
 0x109   :  { %v297_v45 = vmax.f32 %v293_v38, 0.0 }
 0x10b   :  { %v317_v57 = vrot.slane %v297_v45, 1  ;;  %v301_v9 = vrot.slane %v297_v45, 7 }
 0x10c   :  { %v277_v37 = vpop.f32.mrf.mxu2 }
 0x10d   :  { %v286_v39 = vadd.f32 %v277_v37, %v220_v36 }
 0x10f   :  { %v222_v40 = vpop.f32.mrf.mxu1  ;;  %v294_v41 = vadd.f32 %v856_v35, %v286_v39 }
 0x110   :  { %v223_v48 = vadd.f32 %v222_v40, %v173_v44 }
 0x111   :  { %v298_v47 = vmax.f32 %v294_v41, 0.0 }
 0x113   :  { %v315_v49 = vpack.c.bf16 %v298_v47, %v297_v45  ;;  %v318_v52 = vrot.slane %v298_v47, 1  ;;  %v302_v5 = vrot.slane %v298_v47, 7 }
 0x114   :  { %v280_v50 = vpop.f32.mrf.mxu2 }
 0x115   :  { %v287_v51 = vadd.f32 %v280_v50, %v223_v48  ;;  %420 = vmatmul.bf16.vlgmr.msra.gmra.mxu3 %v315_v49  ;;  %v323_v63 = vsel %vm80_vm1, %v317_v57, %v318_v52  ;;  %v307_v13 = vsel %vm43_vm2, %v301_v9, %v302_v5 }
 0x116   :  { %v325_v3 = vmul.f32 %v323_v63, %v973_v30  ;;  %v310_v17 = vmul.f32 %v307_v13, %v989_v43 }
 0x117   :  { %v295_v54 = vadd.f32 %v856_v35, %v287_v51  ;;  %v224_v55 = vpop.f32.mrf.mxu1 }
 0x118   :  { %v225_v62 = vadd.f32 %v224_v55, %v175_v60 }
 0x119   :  { %v299_v59 = vmax.f32 %v295_v54, 0.0 }
 0x11b   :  { %v319_v61 = vrot.slane %v299_v59, 1  ;;  %v303_v6 = vrot.slane %v299_v59, 7 }
 0x11c   :  { %v282_v0 = vpop.f32.mrf.mxu2 }
 0x11d   :  { %v288_v1 = vadd.f32 %v282_v0, %v225_v62  ;;  %v322_v2 = vsel %vm80_vm1, %v318_v52, %v319_v61  ;;  %v306_v14 = vsel %vm43_vm2, %v302_v5, %v303_v6 }
 0x11e   :  { %v326_v4 = vmul.f32 %v322_v2, %v987_v42  ;;  %v311_v18 = vmul.f32 %v306_v14, %v1005_v56 }
 0x11f   :  { %v296_v7 = vadd.f32 %v856_v35, %v288_v1 }
 0x120   :  { %v329_v8 = vpack.c.bf16 %v326_v4, %v325_v3 }
 0x121   :  { %v300_v10 = vmax.f32 %v296_v7, 0.0 }
 0x122   :  { %571 = vmatmul.bf16.vlgmr.msrb.gmra.mxu1 %v329_v8 }
 0x123   :  { %v304_v11 = vrot.slane %v300_v10, 7  ;;  %v316_v12 = vpack.c.bf16 %v300_v10, %v299_v59  ;;  %v320_v15 = vrot.slane %v300_v10, 1 }
 0x125   :  { %425 = vmatmul.bf16.gmra.mxu3 %v316_v12  ;;  %v308_v30 = vsel %vm43_vm2, %v304_v11, %v301_v9  ;;  %v305_v42 = vsel %vm43_vm2, %v303_v6, %v304_v11  ;;  %v321_v22 = vsel %vm80_vm1, %v319_v61, %v320_v15  ;;  %v324_v23 = vsel %vm80_vm1, %v320_v15, %v317_v57 }
 0x126   :  { %v309_v16 = vmul.f32 %v308_v30, %v975_v31  ;;  %v312_v19 = vmul.f32 %v305_v42, %v1009_v58  ;;  %v327_v24 = vmul.f32 %v321_v22, %v993_v46  ;;  %v328_v31 = vmul.f32 %v324_v23, %v999_v53 }
 0x128   :  { %v313_v20 = vpack.c.bf16 %v310_v17, %v309_v16  ;;  %v314_v21 = vpack.c.bf16 %v312_v19, %v311_v18  ;;  %v330_v25 = vpack.c.bf16 %v328_v31, %v327_v24 }
 0x12a   :  { %487 = vmatmul.bf16.vlgmr.msrb.gmra.mxu0 %v313_v20  ;;  %492 = vmatmul.bf16.vlgmr.msrb.gmra.mxu2 %v314_v21 }
 0x132   :  { %576 = vmatmul.bf16.gmra.mxu1 %v330_v25 }
 0x198   :  { %v421_v43 = vpop.f32.mrf.mxu3 }
 0x19f   :  { %v572_v56 = vpop.f32.mrf.mxu1 }
 0x1a0   :  { %v423_v26 = vpop.f32.mrf.mxu3 }
 0x1a7   :  { %v488_v58 = vpop.f32.mrf.mxu0  ;;  %v574_v27 = vpop.f32.mrf.mxu1 }
 0x1a8   :  { %v489_v28 = vadd.f32 %v488_v58, %v421_v43  ;;  %v426_v33 = vpop.f32.mrf.mxu3 }
 0x1aa   :  { %v582_v29 = vadd.f32 %v572_v56, %v489_v28 }
 0x1ac   :  { %v590_v34 = vadd.f32 %v857_v32, %v582_v29 }
 0x1ad   :  { %v493_v35 = vpop.f32.mrf.mxu2 }
 0x1ae   :  { %v594_v36 = vmax.f32 %v590_v34, 0.0  ;;  %v494_v46 = vadd.f32 %v493_v35, %v426_v33 }
 0x1af   :  { %v490_v37 = vpop.f32.mrf.mxu0  ;;  %v577_v53 = vpop.f32.mrf.mxu1 }
 0x1b0   :  { %598 = vst [vmem:[%s1136_s6] sm:$0xff] %v594_v36  ;;  %v491_v38 = vadd.f32 %v490_v37, %v423_v26  ;;  %v584_v39 = vadd.f32 %v577_v53, %v494_v46  ;;  %v428_v47 = vpop.f32.mrf.mxu3 }
 0x1b2   :  { %v583_v40 = vadd.f32 %v574_v27, %v491_v38  ;;  %v592_v41 = vadd.f32 %v857_v32, %v584_v39 }
 0x1b4   :  { %v591_v44 = vadd.f32 %v857_v32, %v583_v40  ;;  %v596_v45 = vmax.f32 %v592_v41, 0.0 }
 0x1b5   :  { %v495_v48 = vpop.f32.mrf.mxu2 }
 0x1b6   :  { %v595_v49 = vmax.f32 %v591_v44, 0.0  ;;  %600 = vst [vmem:[%s1136_s6 + $0x10] sm:$0xff] %v596_v45  ;;  %v496_v50 = vadd.f32 %v495_v48, %v428_v47 }
 0x1b7   :  { %v579_v51 = vpop.f32.mrf.mxu1 }
 0x1b8   :  { %599 = vst [vmem:[%s1136_s6 + $0x8] sm:$0xff] %v595_v49  ;;  %v585_v52 = vadd.f32 %v579_v51, %v496_v50 }
 0x1ba   :  { %v593_v54 = vadd.f32 %v857_v32, %v585_v52 }
 0x1bc   :  { %v597_v55 = vmax.f32 %v593_v54, 0.0 }
 0x1be   :  { %601 = vst [vmem:[%s1136_s6 + $0x18] sm:$0xff] %v597_v55 }

</bundles_post_ra>
